<compile_context>
chip_gen: v7x
topology: tpu7x:2x2x1
jax: 0.10.0
libtpu: 0.0.40
codegen_flags: <defaults>
</compile_context>

<pallas_src>
import math
import numpy as np

import jax
import jax.numpy as jnp
from jax.experimental import pallas as pl
from jax.experimental.pallas import tpu as pltpu

# ---------------------------- small config (lane-aligned) ----------------------------
B, S = 2, 8            # batch, sequence -> N = 16 token rows
DIM = 128              # input features   (lane aligned)
HIDDEN = 256           # hidden_dim
FINAL = DIM            # final_dim=None -> final_dim == dim

_SQRT_2_OVER_PI = math.sqrt(2.0 / math.pi)
_GELU_C = 0.044715


def _gelu_tanh(x):
    # tanh-approximate GELU; x + c*x^3 factored as x*(1 + c*x^2) (one fewer VALU mul).
    # The tanh goes to the EUP; all elementwise math stays f32 (portable to v5e).
    # TODO(synk): torch.nn.GELU() default is the exact erf form; swap in erf for bit-level parity.
    x_sq = x * x
    inner = _SQRT_2_OVER_PI * (x * (1.0 + _GELU_C * x_sq))
    return 0.5 * x * (1.0 + jnp.tanh(inner))


# ------------------------------------- kernel ----------------------------------------
def mlp_kernel(x_ref, w1_ref, b1_ref, w2_ref, b2_ref, o_ref):
    # x is already bf16 (host cast): bf16 MXU operands, f32 accumulation, f32 bias add.
    h = jnp.dot(x_ref[...], w1_ref[...], preferred_element_type=jnp.float32) + b1_ref[...]
    h = _gelu_tanh(h)                                          # f32 elementwise
    # nn.Dropout(p=0.0) is the identity -> omitted.
    y = jnp.dot(h.astype(jnp.bfloat16), w2_ref[...],
                preferred_element_type=jnp.float32) + b2_ref[...]
    o_ref[...] = y.astype(o_ref.dtype)                         # lane-dense store


# --------------------------------- tile selection -------------------------------------
def _pick_tile_m(n, cap=512):
    """Row tile: multiple of 8, <= cap.

    Prefers (a) a tile that divides the sublane-padded row count (no runtime pad copy) and
    (b) >= 2 grid steps so v7x's second TensorCore gets work; at large N the tile lands in
    [cap/2, cap] so each jnp.dot fills the MXU rows.
    """
    n8 = pl.cdiv(max(int(n), 1), 8) * 8               # sublane-aligned row count
    if n8 <= cap:
        # Small N: whole slab in one tile, or split in two for the second TensorCore.
        tile = n8 // 2 if (n8 > 8 and (n8 // 2) % 8 == 0) else n8
    else:
        # Large N: biggest tile in [cap/2, cap] dividing n8 (no pad); else fall back to cap.
        tile = cap
        for t in range(cap, cap // 2 - 1, -8):
            if n8 % t == 0:
                tile = t
                break
    return tile, pl.cdiv(n, tile) * tile


# ------------------------------------ wrapper ----------------------------------------
def mlp_forward(x, w1, b1, w2, b2, *, out_dtype=jnp.float32, tile_cap=512):
    """x: [..., dim]. Returns [..., final_dim] in out_dtype (f32 default, bf16 optional)."""
    lead = x.shape[:-1]
    dim = x.shape[-1]
    hidden = w1.shape[1]
    final = w2.shape[1]
    n = int(np.prod(lead)) if lead else 1

    tile_m, n_pad = _pick_tile_m(n, tile_cap)

    # Host-side layout / dtype prep: flatten tokens and cast activations to bf16 once
    # (halves the x DMA bytes; MXU operand is bf16 anyway); weights pre-cast to bf16;
    # biases reshaped to [1, C] f32 rows. Kernel body does zero reshapes/casts on x.
    x2 = x.reshape(n, dim).astype(jnp.bfloat16)
    if n_pad != n:
        # Only hit when n isn't a multiple of 8 (or doesn't split into [cap/2, cap] tiles).
        # Padded rows compute gelu(b1)@w2 + b2 garbage and are sliced off below.
        x2 = jnp.pad(x2, ((0, n_pad - n), (0, 0)))
    w1b = w1.astype(jnp.bfloat16)
    w2b = w2.astype(jnp.bfloat16)
    b1r = b1.reshape(1, hidden).astype(jnp.float32)
    b2r = b2.reshape(1, final).astype(jnp.float32)

    # VMEM budget: double-buffered streaming x/out tiles + single-buffered resident weights
    # + f32 hidden intermediate; headroom, clamped into [16 MiB, 64 MiB] (v7x physical VMEM).
    out_bytes = jnp.dtype(out_dtype).itemsize
    vmem_bytes = (2 * tile_m * dim * 2            # x tiles (bf16, double-buffered)
                  + 2 * tile_m * final * out_bytes  # out tiles (double-buffered)
                  + dim * hidden * 2 + hidden * final * 2  # weights (bf16, single-buffered)
                  + (hidden + final) * 4          # biases
                  + tile_m * hidden * 4)          # f32 hidden intermediate
    vmem_limit = int(min(max(int(vmem_bytes * 1.5), 16 << 20), 64 << 20))

    grid = (n_pad // tile_m,)
    out = pl.pallas_call(
        mlp_kernel,
        out_shape=jax.ShapeDtypeStruct((n_pad, final), out_dtype),
        grid_spec=pltpu.PrefetchScalarGridSpec(
            num_scalar_prefetch=0,
            grid=grid,
            in_specs=[
                # streaming activation tiles (default double-buffering)
                pl.BlockSpec((tile_m, dim), lambda i: (i, 0)),
                # VMEM-resident parameters: constant index_map -> single buffer
                pl.BlockSpec((dim, hidden), lambda i: (0, 0), pipeline_mode=pl.Buffered(1)),
                pl.BlockSpec((1, hidden),   lambda i: (0, 0), pipeline_mode=pl.Buffered(1)),
                pl.BlockSpec((hidden, final), lambda i: (0, 0), pipeline_mode=pl.Buffered(1)),
                pl.BlockSpec((1, final),    lambda i: (0, 0), pipeline_mode=pl.Buffered(1)),
            ],
            out_specs=pl.BlockSpec((tile_m, final), lambda i: (i, 0)),
        ),
        compiler_params=pltpu.CompilerParams(
            dimension_semantics=("parallel",),      # independent row tiles -> megacore split
            vmem_limit_bytes=vmem_limit),
    )(x2, w1b, b1r, w2b, b2r)

    if n_pad != n:
        out = out[:n]
    return out.reshape(*lead, final)


mlp_forward_jit = jax.jit(mlp_forward, static_argnames=("out_dtype", "tile_cap"))


# ----------------------------------- references --------------------------------------
def mlp_reference_exact(x, w1, b1, w2, b2):
    """Module semantics in f32 with exact (erf) GELU, as in torch.nn.GELU() default."""
    h = jax.nn.gelu(jnp.dot(x, w1) + b1, approximate=False)
    return jnp.dot(h, w2) + b2


def mlp_reference_matched(x, w1, b1, w2, b2):
    """Same numerics as the kernel (bf16 MXU operands, f32 accumulate, tanh GELU), via XLA."""
    h = jnp.dot(x.astype(jnp.bfloat16), w1.astype(jnp.bfloat16),
                preferred_element_type=jnp.float32) + b1
    h = _gelu_tanh(h)
    return jnp.dot(h.astype(jnp.bfloat16), w2.astype(jnp.bfloat16),
                   preferred_element_type=jnp.float32) + b2


# -------------------------------------- main -----------------------------------------
if __name__ == "__main__":
    key = jax.random.PRNGKey(0)
    kx, k1, k2, k3, k4 = jax.random.split(key, 5)

    x = jax.random.normal(kx, (B, S, DIM), jnp.float32)
    w1 = jax.random.normal(k1, (DIM, HIDDEN), jnp.float32) * (1.0 / math.sqrt(DIM))
    b1 = jax.random.normal(k2, (HIDDEN,), jnp.float32) * 0.02
    w2 = jax.random.normal(k3, (HIDDEN, FINAL), jnp.float32) * (1.0 / math.sqrt(HIDDEN))
    b2 = jax.random.normal(k4, (FINAL,), jnp.float32) * 0.02

    out = mlp_forward_jit(x, w1, b1, w2, b2)
    out = jax.block_until_ready(out)
    assert out.shape == (B, S, FINAL) and out.dtype == jnp.float32

    # 1) Tight check of the Pallas lowering against identical math lowered through XLA.
    ref_m = mlp_reference_matched(x.reshape(B * S, DIM), w1, b1.reshape(1, -1),
                                  w2, b2.reshape(1, -1)).reshape(B, S, FINAL)
    np.testing.assert_allclose(np.asarray(out), np.asarray(ref_m), rtol=1e-4, atol=1e-4)

    # 2) Sanity check against exact f32 module semantics (bf16 + tanh-GELU drift bound).
    ref_e = mlp_reference_exact(x.reshape(B * S, DIM), w1, b1, w2, b2).reshape(B, S, FINAL)
    np.testing.assert_allclose(np.asarray(out), np.asarray(ref_e), rtol=2e-2, atol=5e-2)

    print("KERNEL_OK")
</pallas_src>

<mosaic_0001>
module attributes {stable_mosaic.version = 11 : i64} {
  func.func @mlp_kernel(%arg0: i32, %arg1: memref<8x128xbf16, #tpu.memory_space<vmem>>, %arg2: memref<128x256xbf16, #tpu.memory_space<vmem>>, %arg3: memref<1x256xf32, #tpu.memory_space<vmem>>, %arg4: memref<256x128xbf16, #tpu.memory_space<vmem>>, %arg5: memref<1x128xf32, #tpu.memory_space<vmem>>, %arg6: memref<8x128xf32, #tpu.memory_space<vmem>>) attributes {dimension_semantics = [#tpu.dimension_semantics<parallel>], iteration_bounds = array<i64: 2>, scalar_prefetch = 0 : i64, scratch_operands = 0 : i64, tpu.core_type = #tpu.core_type<tc>, window_params = [{transform_indices = @transform_0, window_bounds = array<i64: 8, 128>}, {pipeline_mode = #tpu.pipeline_mode<synchronous>, transform_indices = @transform_1, window_bounds = array<i64: 128, 256>}, {pipeline_mode = #tpu.pipeline_mode<synchronous>, transform_indices = @transform_2, window_bounds = array<i64: 1, 256>}, {pipeline_mode = #tpu.pipeline_mode<synchronous>, transform_indices = @transform_3, window_bounds = array<i64: 256, 128>}, {pipeline_mode = #tpu.pipeline_mode<synchronous>, transform_indices = @transform_4, window_bounds = array<i64: 1, 128>}, {transform_indices = @transform_5, window_bounds = array<i64: 8, 128>}]} {
    %c0 = arith.constant 0 : index
    %c0_0 = arith.constant 0 : index
    %0 = vector.load %arg1[%c0, %c0_0] : memref<8x128xbf16, #tpu.memory_space<vmem>>, vector<8x128xbf16>
    %c0_1 = arith.constant 0 : index
    %c0_2 = arith.constant 0 : index
    %1 = vector.load %arg2[%c0_1, %c0_2] : memref<128x256xbf16, #tpu.memory_space<vmem>>, vector<128x256xbf16>
    %cst = arith.constant dense<0.000000e+00> : vector<8x256xf32>
    %2 = tpu.matmul %0, %1, %cst {dimension_numbers = #tpu.dot_dimension_numbers<[1], [0], [0], [1], [0, 0, 1, 1], [], []>} : vector<8x128xbf16>, vector<128x256xbf16>, vector<8x256xf32> -> vector<8x256xf32>
    %c0_3 = arith.constant 0 : index
    %c0_4 = arith.constant 0 : index
    %3 = vector.load %arg3[%c0_3, %c0_4] : memref<1x256xf32, #tpu.memory_space<vmem>>, vector<1x256xf32>
    %4 = vector.broadcast %3 : vector<1x256xf32> to vector<8x256xf32>
    %5 = arith.addf %2, %4 : vector<8x256xf32>
    %6 = arith.mulf %5, %5 : vector<8x256xf32>
    %cst_5 = arith.constant 4.471500e-02 : f32
    %7 = vector.broadcast %cst_5 : f32 to vector<8x256xf32>
    %8 = arith.mulf %7, %6 : vector<8x256xf32>
    %cst_6 = arith.constant 1.000000e+00 : f32
    %9 = vector.broadcast %cst_6 : f32 to vector<8x256xf32>
    %10 = arith.addf %9, %8 : vector<8x256xf32>
    %11 = arith.mulf %5, %10 : vector<8x256xf32>
    %cst_7 = arith.constant 0.797884583 : f32
    %12 = vector.broadcast %cst_7 : f32 to vector<8x256xf32>
    %13 = arith.mulf %12, %11 : vector<8x256xf32>
    %cst_8 = arith.constant 5.000000e-01 : f32
    %14 = vector.broadcast %cst_8 : f32 to vector<8x256xf32>
    %15 = arith.mulf %14, %5 : vector<8x256xf32>
    %16 = math.tanh %13 : vector<8x256xf32>
    %cst_9 = arith.constant 1.000000e+00 : f32
    %17 = vector.broadcast %cst_9 : f32 to vector<8x256xf32>
    %18 = arith.addf %17, %16 : vector<8x256xf32>
    %19 = arith.mulf %15, %18 : vector<8x256xf32>
    %20 = arith.truncf %19 : vector<8x256xf32> to vector<8x256xbf16>
    %c0_10 = arith.constant 0 : index
    %c0_11 = arith.constant 0 : index
    %21 = vector.load %arg4[%c0_10, %c0_11] : memref<256x128xbf16, #tpu.memory_space<vmem>>, vector<256x128xbf16>
    %cst_12 = arith.constant dense<0.000000e+00> : vector<8x128xf32>
    %22 = tpu.matmul %20, %21, %cst_12 {dimension_numbers = #tpu.dot_dimension_numbers<[1], [0], [0], [1], [0, 0, 1, 1], [], []>} : vector<8x256xbf16>, vector<256x128xbf16>, vector<8x128xf32> -> vector<8x128xf32>
    %c0_13 = arith.constant 0 : index
    %c0_14 = arith.constant 0 : index
    %23 = vector.load %arg5[%c0_13, %c0_14] : memref<1x128xf32, #tpu.memory_space<vmem>>, vector<1x128xf32>
    %24 = vector.broadcast %23 : vector<1x128xf32> to vector<8x128xf32>
    %25 = arith.addf %22, %24 : vector<8x128xf32>
    %c0_15 = arith.constant 0 : index
    %c0_16 = arith.constant 0 : index
    %26 = vector.load %arg6[%c0_15, %c0_16] : memref<8x128xf32, #tpu.memory_space<vmem>>, vector<8x128xf32>
    tpu.vector_store %arg6[%c0_15, %c0_16], %25 {strides = array<i32>} : memref<8x128xf32, #tpu.memory_space<vmem>>, vector<8x128xf32>,
    return
  }
  func.func @transform_0(%arg0: i32) -> (i32, i32) {
    %c0_i32 = arith.constant 0 : i32
    %c0_i32_0 = arith.constant 0 : i32
    return %arg0, %c0_i32 : i32, i32
  }
  func.func @transform_1(%arg0: i32) -> (i32, i32) {
    %c0_i32 = arith.constant 0 : i32
    %c0_i32_0 = arith.constant 0 : i32
    %c0_i32_1 = arith.constant 0 : i32
    return %c0_i32, %c0_i32_0 : i32, i32
  }
  func.func @transform_2(%arg0: i32) -> (i32, i32) {
    %c0_i32 = arith.constant 0 : i32
    %c0_i32_0 = arith.constant 0 : i32
    %c0_i32_1 = arith.constant 0 : i32
    return %c0_i32, %c0_i32_0 : i32, i32
  }
  func.func @transform_3(%arg0: i32) -> (i32, i32) {
    %c0_i32 = arith.constant 0 : i32
    %c0_i32_0 = arith.constant 0 : i32
    %c0_i32_1 = arith.constant 0 : i32
    return %c0_i32, %c0_i32_0 : i32, i32
  }
  func.func @transform_4(%arg0: i32) -> (i32, i32) {
    %c0_i32 = arith.constant 0 : i32
    %c0_i32_0 = arith.constant 0 : i32
    %c0_i32_1 = arith.constant 0 : i32
    return %c0_i32, %c0_i32_0 : i32, i32
  }
  func.func @transform_5(%arg0: i32) -> (i32, i32) {
    %c0_i32 = arith.constant 0 : i32
    %c0_i32_0 = arith.constant 0 : i32
    return %arg0, %c0_i32 : i32, i32
  }
}

</mosaic_0001>

<bundles_post_ra>
// kernel: mlp_forward.1
= control target key start
LH: loop header
LB: loop body
LE: loop exit
PB: predicated region body
PF: predicated region fallthrough
CT: control target
= control target key end

     0   :  { %10 = vsyncpa [#allocation3], 0  ;;  %s1087_s0 = inlined_call_operand.vmem [shape: bf16[16,128], index: 0, kind: input, shape index: {}]   ;;  %s1088_s1 = inlined_call_operand.vmem [shape: bf16[128,256], index: 1, kind: input, shape index: {}]   ;;  %s1089_s2 = inlined_call_operand.vmem [shape: f32[1,256], index: 2, kind: input, shape index: {}]   ;;  %s1090_s3 = inlined_call_operand.vmem [shape: bf16[256,128], index: 3, kind: input, shape index: {}]   ;;  %s1091_s4 = inlined_call_operand.vmem [shape: f32[1,128], index: 4, kind: input, shape index: {}]   ;;  %s1092_s5 = inlined_call_operand.hbm [shape: f32[16,128], index: 5, kind: output, shape index: {}]  }
   0x1   :  { %12 = vsyncpa [#allocation3 + $0x1], 0  ;;  %s885_s18 = smov 0   ;;  %s887_s19 = smov 0  }
   0x2   :  { %s889_s20 = smov 0   ;;  %s891_s21 = smov 0  }
   0x3 LB: > { %s906_s22 = sadd.s32 4294967295, %s851_s21   ;;  %s640_s23 = sadd.s32 4294967294, %s851_s21   ;;  %s851_s21 = sphi %s891_s21, %s1098_s21   ;;  %s847_s20 = sphi %s889_s20, %s1097_s20   ;;  %s843_s19 = sphi %s887_s19, %s1096_s19   ;;  %s839_s18 = sphi %s885_s18, %s1095_s18  }
   0x4   : > { %s910_s24 = sadd.s32 1, %s851_s21   ;;  %s135_s25 = sadd.s32 1, %s847_s20 }
   0x5   : > { %s132_s26 = ssub.s32 %s851_s21, %s910_s24  ;;  %p145_p0 = scmp.ne.s32.totalorder %s847_s20, %s843_s19 }
   0x6   : > { %p133_p1 = scmp.eq.s32.totalorder %s132_s26, 0  ;;  %p146_p2 = scmp.eq.s32.totalorder %s906_s22, 1 }
   0x7   : > { %p151_p3 = scmp.ne.s32.totalorder %s843_s19, %s839_s18  ;;  %p152_p4 = scmp.eq.s32.totalorder %s640_s23, 1 }
   0x8   : > { %s921_s27 = scalar_select %p133_p1, %s847_s20, %s135_s25  }
   0x9   : > { %p923_p5 = por %p146_p2, %p145_p0  ;;  %p927_p6 = por %p152_p4, %p151_p3 }
   0xa   : > { %p643_p7 = scmp.ge.s32.totalorder %s851_s21, 1  ;;  %p189_p8 = scmp.lt.s32.totalorder %s851_s21, 3 }
   0xc   : > { %p190_p9 = pnand %p643_p7, %p189_p8 }
   0xd   : > { %v745_v0 = vld [vmem:[%s1088_s1 + $0x4] ss:$8 sps:$4 sm:$0xff] (!%p190_p9)   ;;  %v747_v1 = vld [vmem:[%s1088_s1] ss:$8 sps:$4 sm:$0xff] (!%p190_p9)   ;;  %v853_v2 = vmov (!%p190_p9), 0   ;;  %p216_p10 = scmp.lt.s32.totalorder (!%p190_p9), %s906_s22, 1  ;;  %v240_v34 = vlaneseq (!%p190_p9) }
   0xe   : > { %193 = sbr.rel (%p190_p9) target bundleno = 520 (0x208), region = 40  ;;  %362 = vmatprep.mubr.bf16.mxu0 (!%p190_p9), %v853_v2  ;;  %330 = vmatprep.subr.bf16.mxu0 (!%p190_p9), %v745_v0  ;;  %v748_v3 = vld [vmem:[%s1088_s1 + $0x14] ss:$8 sps:$4 sm:$0xff] (!%p190_p9)   ;;  %v750_v4 = vld [vmem:[%s1088_s1 + $0x10] ss:$8 sps:$4 sm:$0xff] (!%p190_p9)   ;;  %v769_v18 = vld [vmem:[%s1090_s3 + $0x40] sm:$0xff] (!%p190_p9)  }
   0xf   : > { %331 = vmatpush1.bf16.msra.mxu0 (!%p190_p9), %v747_v1  ;;  %v751_v5 = vld [vmem:[%s1088_s1 + $0x24] ss:$8 sps:$4 sm:$0xff] (!%p190_p9)   ;;  %v753_v6 = vld [vmem:[%s1088_s1 + $0x20] ss:$8 sps:$4 sm:$0xff] (!%p190_p9)   ;;  %v754_v7 = vld [vmem:[%s1088_s1 + $0x34] ss:$8 sps:$4 sm:$0xff] (!%p190_p9)   ;;  %683 = vmatprep.subr.bf16.mxu1 (!%p190_p9), %v769_v18 }
  0x10   : > { %332 = vmatprep.subr.bf16.mxu0 (!%p190_p9), %v748_v3  ;;  %v756_v8 = vld [vmem:[%s1088_s1 + $0x30] ss:$8 sps:$4 sm:$0xff] (!%p190_p9)   ;;  %v757_v9 = vld [vmem:[%s1088_s1 + $0x44] ss:$8 sps:$4 sm:$0xff] (!%p190_p9)   ;;  %v759_v10 = vld [vmem:[%s1088_s1 + $0x40] ss:$8 sps:$4 sm:$0xff] (!%p190_p9)  }
  0x11   : > { %v760_v11 = vld [vmem:[%s1088_s1 + $0x54] ss:$8 sps:$4 sm:$0xff] (!%p190_p9)   ;;  %v762_v12 = vld [vmem:[%s1088_s1 + $0x50] ss:$8 sps:$4 sm:$0xff] (!%p190_p9)   ;;  %v763_v13 = vld [vmem:[%s1088_s1 + $0x64] ss:$8 sps:$4 sm:$0xff] (!%p190_p9)  }
  0x12   : > { %v765_v14 = vld [vmem:[%s1088_s1 + $0x60] ss:$8 sps:$4 sm:$0xff] (!%p190_p9)   ;;  %v766_v15 = vld [vmem:[%s1088_s1 + $0x74] ss:$8 sps:$4 sm:$0xff] (!%p190_p9)   ;;  %v768_v16 = vld [vmem:[%s1088_s1 + $0x70] ss:$8 sps:$4 sm:$0xff] (!%p190_p9)  }
  0x13   : > { %333 = vmatpush1.bf16.msra.mxu0 (!%p190_p9), %v750_v4  ;;  %v770_v19 = vld [vmem:[%s1090_s3] sm:$0xff] (!%p190_p9)   ;;  %v771_v20 = vld [vmem:[%s1090_s3 + $0x48] sm:$0xff] (!%p190_p9)   ;;  %v773_v22 = vld [vmem:[%s1090_s3 + $0x50] sm:$0xff] (!%p190_p9)   ;;  %v241_v35 = vshrl.u32 (!%p190_p9), %v240_v34, 7  ;;  %s213_s13 = sand.u32 (!%p190_p9), 1, %s843_s19   ;;  %s680_s16 = sshll.u32 (!%p190_p9), %s906_s22, 7 }
  0x14   : > { %334 = vmatprep.subr.bf16.mxu0 (!%p190_p9), %v751_v5  ;;  %684 = vmatpush3.bf16.msra.mxu1 (!%p190_p9), %v770_v19  ;;  %v772_v21 = vld [vmem:[%s1090_s3 + $0x8] sm:$0xff] (!%p190_p9)   ;;  %v774_v23 = vld [vmem:[%s1090_s3 + $0x10] sm:$0xff] (!%p190_p9)   ;;  %v775_v24 = vld [vmem:[%s1090_s3 + $0x58] sm:$0xff] (!%p190_p9)   ;;  %s644_s14 = sshll.u32 (!%p190_p9), %s213_s13, 3  ;;  %s1045_s6 = scalar_lea.hbm (!%p190_p9), %s1092_s5, %s680_s16 }
  0x15   : > { %s217_s30 = scalar_select %p216_p10, %s906_s22, 1  ;;  %685 = vmatprep.subr.bf16.mxu1 %v771_v20  ;;  %v776_v25 = vld [vmem:[%s1090_s3 + $0x18] sm:$0xff]   ;;  %v777_v26 = vld [vmem:[%s1090_s3 + $0x60] sm:$0xff]   ;;  %v779_v28 = vld [vmem:[%s1090_s3 + $0x68] sm:$0xff]   ;;  %v242_v36 = vsub.s32 0, %v241_v35  ;;  %v246_v38 = vsub.s32 1, %v241_v35 }
  0x16   : > { %v778_v27 = vld [vmem:[%s1090_s3 + $0x20] sm:$0xff]   ;;  %v780_v29 = vld [vmem:[%s1090_s3 + $0x28] sm:$0xff]   ;;  %v781_v30 = vld [vmem:[%s1090_s3 + $0x70] sm:$0xff]   ;;  %s215_s17 = scalar_lea.vmem [#allocation2], %s644_s14  ;;  %s568_s7 = scalar_lea.sflag [#allocation3], %s213_s13 }
  0x17   : > { %335 = vmatpush1.bf16.msra.mxu0 %v753_v6  ;;  %s645_s26 = sshll.u32 %s217_s30, 2  ;;  %v782_v31 = vld [vmem:[%s1090_s3 + $0x30] sm:$0xff]   ;;  %v783_v32 = vld [vmem:[%s1090_s3 + $0x78] sm:$0xff]   ;;  %v238_v37 = vld [vmem:[%s1089_s2] sm:$0x3]  ;;  %s581_s23 = sshll.u32 %s215_s17, 4  ;;  %s1047_s23 = int_to_ptr.vmem [resolvable:$true] %s581_s23 }
  0x18   : > { %336 = vmatprep.subr.bf16.mxu0 %v754_v7  ;;  %s219_s10 = scalar_lea.vmem %s1087_s0, %s645_s26  ;;  %686 = vmatpush3.bf16.msra.mxu1 %v772_v21  ;;  %v784_v33 = vld [vmem:[%s1090_s3 + $0x38] sm:$0xff]   ;;  %v243_v39 = vrot.slane %v238_v37, %v242_v36  ;;  %v247_v40 = vrot.slane %v238_v37, %v246_v38  ;;  %v662_v4 = vld [vmem:[%s1091_s4] ss:$0 sm:$0xff]  ;;  %s789_s8 = scalar_lea.vmem %s1047_s23, 128 }
  0x19   : > { %v221_v17 = vld [vmem:[%s219_s10] sm:$0xf]  ;;  %687 = vmatprep.subr.bf16.mxu1 %v773_v22  ;;  %p790_p11 = scmp.ne.s32.totalorder %s1047_s23, %s789_s8  ;;  %s854_s22 = smov [#allocation2]  }
  0x1a   : > { %s793_s9 = sshll.u32 %s854_s22, 4  ;;  %s794_s9 = int_to_ptr.vmem [resolvable:$false] %s793_s9 }
  0x1b   : > { %337 = vmatpush1.bf16.msra.mxu0 %v756_v8  ;;  %p791_p12 = pnand %p790_p11, %p923_p5  ;;  %s795_s10 = scalar_lea.vmem %s794_s9, 256 }
  0x1c   : > { %338 = vmatprep.subr.bf16.mxu0 %v757_v9  ;;  %688 = vmatpush3.bf16.msra.mxu1 %v774_v23  ;;  %p796_p0 = scmp.lt.s32.totalorder %s1047_s23, %s794_s9  ;;  %p797_p1 = scmp.lt.s32.totalorder %s795_s10, %s789_s8 }
  0x1d   : > { %689 = vmatprep.subr.bf16.mxu1 %v775_v24  ;;  %p792_p13 = pneg %p791_p12 }
  0x1e   : > { %p798_p2 = por %p797_p1, %p796_p0 }
  0x1f   : > { %339 = vmatpush1.bf16.msra.mxu0 %v759_v10 }
  0x20   : > { %340 = vmatprep.subr.bf16.mxu0 %v760_v11  ;;  %690 = vmatpush3.bf16.msra.mxu1 %v776_v25  ;;  %p799_p3 = pnand %p798_p2, %p792_p13 }
  0x21   : > { %691 = vmatprep.subr.bf16.mxu1 %v777_v26 }
  0x23   : > { %341 = vmatpush1.bf16.msra.mxu0 %v762_v12 }
  0x24   : > { %342 = vmatprep.subr.bf16.mxu0 %v763_v13  ;;  %692 = vmatpush3.bf16.msra.mxu1 %v778_v27 }
  0x25   : > { %693 = vmatprep.subr.bf16.mxu1 %v779_v28 }
  0x27   : > { %343 = vmatpush1.bf16.msra.mxu0 %v765_v14 }
  0x28   : > { %344 = vmatprep.subr.bf16.mxu0 %v766_v15  ;;  %694 = vmatpush3.bf16.msra.mxu1 %v780_v29 }
  0x29   : > { %695 = vmatprep.subr.bf16.mxu1 %v781_v30 }
  0x2b   : > { %345 = vmatpush1.bf16.msra.mxu0 %v768_v16 }
  0x2c   : > { %696 = vmatpush3.bf16.msra.mxu1 %v782_v31 }
  0x2d   : > { %697 = vmatprep.subr.bf16.mxu1 %v783_v32 }
  0x2e   : > { %363 = vmatmul.mubr.bf16.vlgmr.msra.gmra.mrb[0].mxu0 %v221_v17 }
  0x30   : > { %698 = vmatpush3.bf16.msra.mxu1 %v784_v33 }
 0x101   : > { %v364_v41 = vpop.f32.mrb[0].mxu0 }
 0x102   : > { %v365_v42 = vadd.f32 %v364_v41, %v243_v39  ;;  %v366_v43 = vpop.f32.mrb[1].mxu0 }
 0x103   : > { %v367_v44 = vadd.f32 %v366_v43, %v247_v40  ;;  %v368_v45 = vpop.f32.mrb[2].mxu0 }
 0x104   : > { %v371_v46 = vmul.f32 %v365_v42, %v365_v42  ;;  %v369_v47 = vpop.f32.mrb[3].mxu0  ;;  %v381_v59 = vmul.f32 0.5, %v365_v42 }
 0x105   : > { %v372_v48 = vmul.f32 %v367_v44, %v367_v44  ;;  %v382_v61 = vmul.f32 0.5, %v367_v44 }
 0x106   : > { %v373_v49 = vmul.f32 0.044715, %v371_v46 }
 0x107   : > { %v374_v50 = vmul.f32 0.044715, %v372_v48 }
 0x108   : > { %v375_v51 = vadd.f32 1.0, %v373_v49 }
 0x109   : > { %v376_v52 = vadd.f32 1.0, %v374_v50 }
 0x10a   : > { %v377_v53 = vmul.f32 %v375_v51, %v365_v42 }
 0x10b   : > { %v378_v54 = vmul.f32 %v376_v52, %v367_v44 }
 0x10c   : > { %v379_v55 = vmul.f32 0.7978846, %v377_v53 }
 0x10d   : > { %v380_v56 = vmul.f32 0.7978846, %v378_v54 }
 0x10e   : > { %785 = vtanh.f32 %v379_v55 }
 0x10f   : > { %787 = vtanh.f32 %v380_v56 }
 0x118   : > { %v786_v57 = vpop.eup %785 }
 0x119   : > { %v788_v58 = vpop.eup %787  ;;  %v385_v60 = vadd.f32 1.0, %v786_v57 }
 0x11a   : > { %v386_v62 = vadd.f32 1.0, %v788_v58 }
 0x11b   : > { %v387_v63 = vmul.f32 %v385_v60, %v381_v59 }
 0x11c   : > { %v388_v0 = vmul.f32 %v386_v62, %v382_v61 }
 0x11d   : > { %v389_v2 = vpack.c.bf16 %v387_v63, %v387_v63 }
 0x11e   : > { %v390_v1 = vpack.c.bf16 %v388_v0, %v388_v0 }
 0x120   : > { %558 = vmatprep.mubr.bf16.mxu1 %v390_v1 }
 0x121   : > { %559 = vmatmul.mubr.bf16.vlgmr.msra.gmra.mrb[0].mxu1 %v389_v2 }
 0x1f4   : > { %v699_v3 = vpop.f32.mrb[0].mxu1 }
 0x1f5   : > { %v700_v5 = vpop.f32.mrb[1].mxu1 }
 0x1f6   : > { %v701_v6 = vadd.f32 %v700_v5, %v699_v3  ;;  %v702_v7 = vpop.f32.mrb[2].mxu1 }
 0x1f7   : > { %v703_v8 = vpop.f32.mrb[3].mxu1 }
 0x1f8   : > { %v561_v9 = vadd.f32 %v701_v6, %v662_v4 }
 0x1fa   : > { %566 = vst [vmem:[%s215_s17] sm:$0xff] %v561_v9 }
 0x1fb   : > { %802 = shalt.err (!%p799_p3)
}
 0x1fc   : > { %s803_s11 = scalar_lea.hbm %s1045_s6, 128  ;;  %s807_s14 = scalar_lea.hbm %s1092_s5, 256 }
 0x1fd   : > { %p804_p4 = scmp.ne.s32.totalorder %s1045_s6, %s803_s11  ;;  %p808_p9 = scmp.lt.u32.totalorder %s1045_s6, %s1092_s5 }
 0x1fe   : > { %p809_p10 = scmp.lt.u32.totalorder %s807_s14, %s803_s11  ;;  %p811_p12 = scmp.lt.u32.totalorder %s803_s11, %s1045_s6 }
 0x1ff   : > { %p805_p7 = pnand %p804_p4, %p923_p5 }
 0x200   : > { %p810_p11 = por %p809_p10, %p808_p9 }
 0x201   : > { %p806_p8 = pneg %p805_p7 }
 0x202   : > { %p812_p13 = por %p811_p12, %p810_p11 }
 0x204   : > { %p813_p0 = pnand %p812_p13, %p806_p8 }
 0x206   : > { %816 = shalt.err (!%p813_p0)
}
 0x207   : > { %705 = dma.vmem_to_hbm [thread:$0]  (%p923_p5), %s1047_s23, 128, %s1045_s6, %s568_s7  }
 0x208 PF: > { %p711_p1 = scmp.ge.s32.totalorder %s851_s21, 2  ;;  %s593_s16 = sand.u32 1, %s839_s18  }
 0x209   : > { %s594_s17 = scalar_lea.sflag [#allocation3], %s593_s16 }
 0x20a   : > { %p708_p2 = pnand %p711_p1, %p927_p6 }
 0x20c   : > { %834 = dma.done.wait (!%p708_p2), %s594_s17, 128  }
 0x20d   : > { %836 = vsyncadd (!%p708_p2), %s594_s17, 4294967168  ;;  %p15_p3 = scmp.ge.s32.totalorder %s910_s24, 4   ;;  %s1095_s18 = smov %s843_s19 }
 0x20e   : > { %s1096_s19 = smov %s847_s20  ;;  %s1097_s20 = smov %s921_s27 }
 0x20f   : > { %s1098_s21 = smov %s910_s24  ;;  %17 = sbr.rel (!%p15_p3) target bundleno = 3 (0x3), region = 75 }
 0x216   :  { %599 = vsyncpa [#allocation3], 1 }
 0x217   :  { %601 = vsyncpa [#allocation3 + $0x1], 1 }

</bundles_post_ra>
